<compile_context>
chip_gen: v5e
topology: v5e:2x2
jax: 0.10.0
libtpu: 0.0.40
codegen_flags: <defaults>
</compile_context>

<pallas_src>
import math

import jax
import jax.numpy as jnp
from jax import lax
from jax.experimental import pallas as pl
from jax.experimental.pallas import tpu as pltpu


_MASK_VALUE = -1e30


def _gelu_tanh(x):
    # 0.5 * x * (1 + tanh(sqrt(2/pi) * (x + 0.044715 * x^3)))
    c = math.sqrt(2.0 / math.pi)
    return 0.5 * x * (1.0 + jnp.tanh(c * (x + 0.044715 * x * x * x)))


def _layer_norm(x, scale, shift, eps=1e-5):
    mean = jnp.mean(x, axis=-1, keepdims=True)
    var = jnp.mean((x - mean) ** 2, axis=-1, keepdims=True)   # unbiased=False
    return scale * ((x - mean) * lax.rsqrt(var + eps)) + shift


# ---------------------- kernel 1: LN1 + fused K/V projection ------------------


def _ln1_kv_kernel(x_ref, wkvt_ref, ln1s_ref, ln1b_ref, kv_ref):
    # x_ref:    (1, T1, D) f32
    # wkvt_ref: (2D, D) bf16, rows = [K output features ; V output features]
    # kv_ref:   (1, 2*NH, hd, T1) bf16  -- head-major, sequence in lanes so the
    #           store is lane-dense and kernel 2 reads the natural matmul layout
    two_nh, hd, t1 = kv_ref.shape[1:]

    x = x_ref[0]                                          # (T1, D) f32
    h = _layer_norm(x, ln1s_ref[0], ln1b_ref[0])          # f32 on the VPU
    hbt = jnp.transpose(h).astype(jnp.bfloat16)           # (D, T1), one XLU transpose

    # single MXU op for both K and V: (2D, D) @ (D, T1) -> (2D, T1)
    kvt = jnp.dot(wkvt_ref[...], hbt, preferred_element_type=jnp.float32)

    # leading-dim split (free) + one bulk lane-dense store
    kv_ref[0] = kvt.reshape(two_nh, hd, t1).astype(kv_ref.dtype)


# ---- kernel 2: Q proj + flash attention + out-proj + LN2 + FFN + residuals ----


def _attn_ffn_kernel(x_ref, kv_ref, wq_ref, ln1s_ref, ln1b_ref,
                     wo_ref, bo_ref, ln2s_ref, ln2b_ref,
                     w1_ref, b1_ref, w2_ref, b2_ref,
                     o_ref, q_sc, m_sc, l_sc, acc_sc):
    # x/o_ref: (1, TQ, D) ; kv_ref: (1, 2*NH, hd, TK) ; wq_ref: (NH, D, hd)
    nh, tq, hd = q_sc.shape
    tk = kv_ref.shape[3]
    scale = 1.0 / math.sqrt(hd)

    qi = pl.program_id(1)
    ki = pl.program_id(2)
    n_kv = pl.num_programs(2)

    q_first = qi * tq
    q_last = q_first + (tq - 1)
    k_first = ki * tk
    k_last = k_first + (tk - 1)

    @pl.when(ki == 0)
    def _init():
        # LN1 + Q projection for this query tile (1/sqrt(hd) folded into Q);
        # done once per Q tile, outside the KV loop, so no Q HBM round trip.
        h = _layer_norm(x_ref[0], ln1s_ref[0], ln1b_ref[0])
        hb = h.astype(jnp.bfloat16)
        for n in range(nh):                                  # static unroll
            q_sc[n] = (jnp.dot(hb, wq_ref[n], preferred_element_type=jnp.float32)
                       * scale).astype(q_sc.dtype)
        m_sc[...] = jnp.full_like(m_sc, _MASK_VALUE)
        l_sc[...] = jnp.zeros_like(l_sc)
        acc_sc[...] = jnp.zeros_like(acc_sc)

    def _step(apply_mask):
        q = q_sc[...]                                        # (NH, TQ, hd) bf16
        k = kv_ref[0, :nh]                                   # (NH, hd, TK) bf16
        v = kv_ref[0, nh:]                                   # (NH, hd, TK) bf16

        # head-batched QK^T on the MXU, f32 accumulation
        s = jnp.einsum("nqd,ndk->nqk", q, k,
                       preferred_element_type=jnp.float32)   # (NH, TQ, TK)

        if apply_mask:   # only tiles straddling the diagonal pay for the mask
            row = lax.broadcasted_iota(jnp.int32, (tq, tk), 0) + q_first
            col = lax.broadcasted_iota(jnp.int32, (tq, tk), 1) + k_first
            s = s + jnp.where(col > row, _MASK_VALUE, 0.0)[None, :, :]

        m_prev = m_sc[...]
        m_new = jnp.maximum(m_prev, jnp.max(s, axis=-1, keepdims=True))
        alpha = jnp.exp(m_prev - m_new)
        p = jnp.exp(s - m_new)                               # f32 (EUP)
        l_sc[...] = alpha * l_sc[...] + jnp.sum(p, axis=-1, keepdims=True)
        acc_sc[...] = alpha * acc_sc[...] + jnp.einsum(
            "nqk,ndk->nqd", p.astype(v.dtype), v,
            preferred_element_type=jnp.float32)
        m_sc[...] = m_new

    # strictly-past KV tile: no causal mask needed
    @pl.when(k_last <= q_first)
    def _update_past():
        _step(False)

    # diagonal / partially overlapping tile: apply the causal mask
    @pl.when(jnp.logical_and(k_first <= q_last, k_last > q_first))
    def _update_diag():
        _step(True)

    @pl.when(ki == n_kv - 1)
    def _finalize():
        inv_l = pl.reciprocal(l_sc[...], approx=True)        # EUP slot
        ctx = (acc_sc[...] * inv_l).astype(jnp.bfloat16)     # (NH, TQ, hd)

        # head merge folded into the out-projection: batched matmul + sum over
        # heads (no cross-lane concat)
        attn_h = jnp.einsum("nqh,nhd->nqd", ctx, wo_ref[...],
                            preferred_element_type=jnp.float32)
        attn = jnp.sum(attn_h, axis=0) + bo_ref[0]
        x1 = attn + x_ref[0]                                 # residual 1

        h2 = _layer_norm(x1, ln2s_ref[0], ln2b_ref[0])
        f = jnp.dot(h2.astype(jnp.bfloat16), w1_ref[...],
                    preferred_element_type=jnp.float32) + b1_ref[0]
        f = _gelu_tanh(f)                                    # f32
        f = jnp.dot(f.astype(jnp.bfloat16), w2_ref[...],
                    preferred_element_type=jnp.float32) + b2_ref[0]
        o_ref[0] = (f + x1).astype(o_ref.dtype)              # residual 2


# ----------------------------- wrapper ----------------------------------------


def _pick_tile(T, candidates):
    for c in candidates:
        if T % c == 0:
            return c
    # TODO(synk): pad T to a multiple of 128 and mask padded query rows instead
    # of falling back to a single full-length tile.
    return T


def _vmem_capacity_bytes():
    try:
        return int(pltpu.get_tpu_info().vmem_capacity_bytes)
    except Exception:
        return 64 << 20        # conservative (v7x-sized) fallback


def transformer_block(x, params, num_heads):
    """x: (B, T, D) float32. params: dict of f32 weights. Returns (B, T, D)."""
    B, T, D = x.shape
    H = 4 * D
    assert D % num_heads == 0
    hd = D // num_heads

    cap = _vmem_capacity_bytes()
    small_vmem = cap < (96 << 20)          # v7x: 64 MiB per TensorCore
    hard_cap = (cap * 3) // 4

    # decoupled tiles: kernel 1 is a thin LN+matmul stream (big tiles amortize
    # per-step overhead); kernel 2 keeps smaller Q tiles when VMEM is tight.
    t1 = _pick_tile(T, (512, 256, 128))
    tq = _pick_tile(T, (128, 256) if small_vmem else (256, 128))
    tk = _pick_tile(T, (256, 128))
    n_q, n_k = T // tq, T // tk

    bf16 = jnp.bfloat16
    # fused, pre-transposed K/V weight: rows = [K features ; V features]
    wkvt = jnp.concatenate([params["wk"].T, params["wv"].T], axis=0).astype(bf16)
    # per-head Q weights (NH, D, hd) and out-projection weights (NH, hd, D)
    wq_h = params["wq"].reshape(D, num_heads, hd).transpose(1, 0, 2).astype(bf16)
    wo_h = params["wo"].reshape(num_heads, hd, D).astype(bf16)
    w1 = params["w1"].astype(bf16)
    w2 = params["w2"].astype(bf16)

    # whole-array, single-buffered VMEM residents (constant across the grid)
    vmem = pl.BlockSpec(memory_space=pltpu.MemorySpace.VMEM)

    # scoped-VMEM budget for kernel 2 (residents + pipelined tiles + scratch +
    # transients), clamped to 3/4 of the physical capacity.
    lane = 128
    w_bytes = ((num_heads * D * max(hd, lane)) + (num_heads * hd * D)
               + 2 * D * H) * 2 + (5 * D + H) * 4
    act_bytes = 3 * (tq * D * 4) + 2 * (2 * D * tk * 2)
    scr_bytes = num_heads * tq * (max(hd, lane) * 2 + 2 * lane * 4
                                  + max(hd, lane) * 4)
    tmp_bytes = 2 * num_heads * tq * tk * 4 + num_heads * tq * D * 4 + tq * H * 4
    need = w_bytes + act_bytes + scr_bytes + tmp_bytes
    vmem_limit = int(min(hard_cap, max(32 << 20, int(1.3 * need))))
    # TODO(synk): for very large D (>= 2k) K-tile the FFN weights along the 4D
    #             axis (extra reduction grid axis) so w1/w2 need not be fully
    #             VMEM-resident (v7x 64 MiB budget).

    # ---------------- kernel 1: LN1 + fused K/V projection -------------------
    kv = pl.pallas_call(
        _ln1_kv_kernel,
        out_shape=jax.ShapeDtypeStruct((B, 2 * num_heads, hd, T), bf16),
        grid_spec=pltpu.PrefetchScalarGridSpec(
            num_scalar_prefetch=0,
            grid=(B, T // t1),
            in_specs=[
                pl.BlockSpec((1, t1, D), lambda b, i: (b, i, 0)),   # x
                vmem,                                               # wkvt
                vmem, vmem,                                         # ln1 scale/shift
            ],
            out_specs=pl.BlockSpec((1, 2 * num_heads, hd, t1),
                                   lambda b, i: (b, 0, 0, i)),
        ),
        compiler_params=pltpu.CompilerParams(
            dimension_semantics=("parallel", "parallel"),
            vmem_limit_bytes=vmem_limit,
        ),
    )(x, wkvt, params["ln1_scale"], params["ln1_shift"])

    # -- kernel 2: Q proj + flash attention + out-proj + LN2 + FFN + residuals --
    def kv_map(b, i, j):
        # clamp to the last causally-needed KV block: repeated block index for
        # j beyond it means the pipeliner issues no new DMA for dead tiles.
        return (b, 0, 0, jnp.minimum(j, (i * tq + (tq - 1)) // tk))

    out = pl.pallas_call(
        _attn_ffn_kernel,
        out_shape=jax.ShapeDtypeStruct((B, T, D), x.dtype),
        grid_spec=pltpu.PrefetchScalarGridSpec(
            num_scalar_prefetch=0,
            grid=(B, n_q, n_k),                          # KV reduction axis last
            in_specs=[
                pl.BlockSpec((1, tq, D), lambda b, i, j: (b, i, 0)),   # x (residual + LN1)
                pl.BlockSpec((1, 2 * num_heads, hd, tk), kv_map),      # fused K|V
                vmem,                                                  # wq_h
                vmem, vmem,                                            # ln1 scale/shift
                vmem, vmem,                                            # wo_h, bo
                vmem, vmem,                                            # ln2 scale/shift
                vmem, vmem,                                            # w1, b1
                vmem, vmem,                                            # w2, b2
            ],
            out_specs=pl.BlockSpec((1, tq, D), lambda b, i, j: (b, i, 0)),
            scratch_shapes=[
                pltpu.VMEM((num_heads, tq, hd), bf16),         # Q tile (scaled)
                pltpu.VMEM((num_heads, tq, 1), jnp.float32),   # running max
                pltpu.VMEM((num_heads, tq, 1), jnp.float32),   # running denom
                pltpu.VMEM((num_heads, tq, hd), jnp.float32),  # context accumulator
            ],
        ),
        compiler_params=pltpu.CompilerParams(
            dimension_semantics=("parallel", "parallel", "arbitrary"),
            vmem_limit_bytes=vmem_limit,
        ),
    )(x, kv, wq_h, params["ln1_scale"], params["ln1_shift"],
      wo_h, params["bo"], params["ln2_scale"], params["ln2_shift"],
      w1, params["b1"], w2, params["b2"])
    return out


# ----------------------- pure-JAX reference (f32) ------------------------------


def _transformer_block_ref(x, params, num_heads):
    B, T, D = x.shape
    hd = D // num_heads

    def ln(z, s, b):
        m = z.mean(-1, keepdims=True)
        v = ((z - m) ** 2).mean(-1, keepdims=True)
        return s * (z - m) / jnp.sqrt(v + 1e-5) + b

    h = ln(x, params["ln1_scale"][0], params["ln1_shift"][0])
    q = h @ params["wq"]
    k = h @ params["wk"]
    v = h @ params["wv"]
    q = q.reshape(B, T, num_heads, hd).transpose(0, 2, 1, 3)
    k = k.reshape(B, T, num_heads, hd).transpose(0, 2, 1, 3)
    v = v.reshape(B, T, num_heads, hd).transpose(0, 2, 1, 3)
    s = jnp.einsum("bnqd,bnkd->bnqk", q, k) / math.sqrt(hd)
    causal = jnp.tril(jnp.ones((T, T), bool))
    s = jnp.where(causal[None, None], s, -jnp.inf)
    p = jax.nn.softmax(s, axis=-1)
    ctx = jnp.einsum("bnqk,bnkd->bnqd", p, v).transpose(0, 2, 1, 3).reshape(B, T, D)
    attn = ctx @ params["wo"] + params["bo"][0]
    x1 = x + attn
    h2 = ln(x1, params["ln2_scale"][0], params["ln2_shift"][0])
    f = h2 @ params["w1"] + params["b1"][0]
    c = math.sqrt(2.0 / math.pi)
    f = 0.5 * f * (1.0 + jnp.tanh(c * (f + 0.044715 * f ** 3)))
    f = f @ params["w2"] + params["b2"][0]
    return x1 + f


# ----------------------------- setup / main -------------------------------------


def init_params(key, emb_dim):
    D, H = emb_dim, 4 * emb_dim
    ks = jax.random.split(key, 8)
    s = 0.02
    return {
        # attention (qkv_bias=False, out_proj has bias)
        "wq": s * jax.random.normal(ks[0], (D, D), jnp.float32),
        "wk": s * jax.random.normal(ks[1], (D, D), jnp.float32),
        "wv": s * jax.random.normal(ks[2], (D, D), jnp.float32),
        "wo": s * jax.random.normal(ks[3], (D, D), jnp.float32),
        "bo": jnp.zeros((1, D), jnp.float32),
        # layer norms
        "ln1_scale": jnp.ones((1, D), jnp.float32),
        "ln1_shift": jnp.zeros((1, D), jnp.float32),
        "ln2_scale": jnp.ones((1, D), jnp.float32),
        "ln2_shift": jnp.zeros((1, D), jnp.float32),
        # feed-forward
        "w1": s * jax.random.normal(ks[4], (D, H), jnp.float32),
        "b1": jnp.zeros((1, H), jnp.float32),
        "w2": s * jax.random.normal(ks[5], (H, D), jnp.float32),
        "b2": jnp.zeros((1, D), jnp.float32),
    }


if __name__ == "__main__":
    # small config: batch=2, context_length=8, emb_dim=32, n_heads=4,
    # drop_rate_attn=0, drop_rate_shortcut=0, qkv_bias=False
    B, T, D, NH = 2, 8, 32, 4

    key = jax.random.PRNGKey(0)
    kx, kp = jax.random.split(key)
    x = jax.random.normal(kx, (B, T, D), jnp.float32)
    params = init_params(kp, D)

    out = transformer_block(x, params, num_heads=NH)
    out = jax.block_until_ready(out)
    assert out.shape == (B, T, D)

    ref = _transformer_block_ref(x, params, NH)
    err = float(jnp.max(jnp.abs(out - ref)))
    assert err < 5e-2, f"max abs error vs f32 reference: {err}"
    print("KERNEL_OK")
</pallas_src>

<mosaic_0001>
module attributes {stable_mosaic.version = 11 : i64} {
  func.func @_ln1_kv_kernel(%arg0: i32, %arg1: i32, %arg2: memref<1x8x32xf32, #tpu.memory_space<vmem>>, %arg3: memref<64x32xbf16, #tpu.memory_space<vmem>>, %arg4: memref<1x32xf32, #tpu.memory_space<vmem>>, %arg5: memref<1x32xf32, #tpu.memory_space<vmem>>, %arg6: memref<1x8x8x8xbf16, #tpu.memory_space<vmem>>) attributes {dimension_semantics = [#tpu.dimension_semantics<parallel>, #tpu.dimension_semantics<parallel>], iteration_bounds = array<i64: 2, 1>, scalar_prefetch = 0 : i64, scratch_operands = 0 : i64, tpu.core_type = #tpu.core_type<tc>, window_params = [{transform_indices = @transform_0, window_bounds = array<i64: 1, 8, 32>}, {pipeline_mode = #tpu.pipeline_mode<synchronous>, transform_indices = @transform_1, window_bounds = array<i64: 64, 32>}, {pipeline_mode = #tpu.pipeline_mode<synchronous>, transform_indices = @transform_2, window_bounds = array<i64: 1, 32>}, {pipeline_mode = #tpu.pipeline_mode<synchronous>, transform_indices = @transform_3, window_bounds = array<i64: 1, 32>}, {transform_indices = @transform_4, window_bounds = array<i64: 1, 8, 8, 8>}]} {
    %c0 = arith.constant 0 : index
    %c0_0 = arith.constant 0 : index
    %c0_1 = arith.constant 0 : index
    %0 = vector.load %arg2[%c0, %c0_0, %c0_1] : memref<1x8x32xf32, #tpu.memory_space<vmem>>, vector<1x8x32xf32>
    %1 = vector.shape_cast %0 : vector<1x8x32xf32> to vector<8x32xf32>
    %c0_2 = arith.constant 0 : index
    %c0_3 = arith.constant 0 : index
    %2 = vector.load %arg4[%c0_2, %c0_3] : memref<1x32xf32, #tpu.memory_space<vmem>>, vector<1x32xf32>
    %3 = vector.shape_cast %2 : vector<1x32xf32> to vector<32xf32>
    %c0_4 = arith.constant 0 : index
    %c0_5 = arith.constant 0 : index
    %4 = vector.load %arg5[%c0_4, %c0_5] : memref<1x32xf32, #tpu.memory_space<vmem>>, vector<1x32xf32>
    %5 = vector.shape_cast %4 : vector<1x32xf32> to vector<32xf32>
    %cst = arith.constant dense<0.000000e+00> : vector<8xf32>
    %6 = vector.multi_reduction <add>, %1, %cst [1] : vector<8x32xf32> to vector<8xf32>
    %7 = vector.shape_cast %6 : vector<8xf32> to vector<8x1xf32>
    %cst_6 = arith.constant 3.200000e+01 : f32
    %8 = vector.broadcast %cst_6 : f32 to vector<8x1xf32>
    %9 = arith.divf %7, %8 : vector<8x1xf32>
    %10 = vector.broadcast %9 : vector<8x1xf32> to vector<8x32xf32>
    %11 = arith.subf %1, %10 : vector<8x32xf32>
    %12 = arith.mulf %11, %11 : vector<8x32xf32>
    %cst_7 = arith.constant dense<0.000000e+00> : vector<8xf32>
    %13 = vector.multi_reduction <add>, %12, %cst_7 [1] : vector<8x32xf32> to vector<8xf32>
    %14 = vector.shape_cast %13 : vector<8xf32> to vector<8x1xf32>
    %cst_8 = arith.constant 3.200000e+01 : f32
    %15 = vector.broadcast %cst_8 : f32 to vector<8x1xf32>
    %16 = arith.divf %14, %15 : vector<8x1xf32>
    %17 = vector.broadcast %9 : vector<8x1xf32> to vector<8x32xf32>
    %18 = arith.subf %1, %17 : vector<8x32xf32>
    %cst_9 = arith.constant 9.99999974E-6 : f32
    %19 = vector.broadcast %cst_9 : f32 to vector<8x1xf32>
    %20 = arith.addf %16, %19 : vector<8x1xf32>
    %21 = math.rsqrt %20 : vector<8x1xf32>
    %22 = vector.broadcast %21 : vector<8x1xf32> to vector<8x32xf32>
    %23 = arith.mulf %18, %22 : vector<8x32xf32>
    %24 = vector.shape_cast %3 : vector<32xf32> to vector<1x32xf32>
    %25 = vector.broadcast %24 : vector<1x32xf32> to vector<8x32xf32>
    %26 = arith.mulf %25, %23 : vector<8x32xf32>
    %27 = vector.shape_cast %5 : vector<32xf32> to vector<1x32xf32>
    %28 = vector.broadcast %27 : vector<1x32xf32> to vector<8x32xf32>
    %29 = arith.addf %26, %28 : vector<8x32xf32>
    %30 = tpu.transpose %29, [1, 0] : vector<8x32xf32> -> vector<32x8xf32>
    %31 = arith.truncf %30 : vector<32x8xf32> to vector<32x8xbf16>
    %c0_10 = arith.constant 0 : index
    %c0_11 = arith.constant 0 : index
    %32 = vector.load %arg3[%c0_10, %c0_11] : memref<64x32xbf16, #tpu.memory_space<vmem>>, vector<64x32xbf16>
    %cst_12 = arith.constant dense<0.000000e+00> : vector<64x8xf32>
    %33 = tpu.matmul %32, %31, %cst_12 {dimension_numbers = #tpu.dot_dimension_numbers<[1], [0], [0], [1], [0, 0, 1, 1], [], []>} : vector<64x32xbf16>, vector<32x8xbf16>, vector<64x8xf32> -> vector<64x8xf32>
    %34 = vector.shape_cast %33 : vector<64x8xf32> to vector<8x8x8xf32>
    %35 = arith.truncf %34 : vector<8x8x8xf32> to vector<8x8x8xbf16>
    %c0_13 = arith.constant 0 : index
    %c0_14 = arith.constant 0 : index
    %c0_15 = arith.constant 0 : index
    %c0_16 = arith.constant 0 : index
    %36 = vector.load %arg6[%c0_13, %c0_14, %c0_15, %c0_16] : memref<1x8x8x8xbf16, #tpu.memory_space<vmem>>, vector<1x8x8x8xbf16>
    %37 = vector.shape_cast %36 : vector<1x8x8x8xbf16> to vector<8x8x8xbf16>
    %38 = vector.shape_cast %35 : vector<8x8x8xbf16> to vector<1x8x8x8xbf16>
    tpu.vector_store %arg6[%c0_13, %c0_14, %c0_15, %c0_16], %38 {strides = array<i32>} : memref<1x8x8x8xbf16, #tpu.memory_space<vmem>>, vector<1x8x8x8xbf16>,
    return
  }
  func.func @transform_0(%arg0: i32, %arg1: i32) -> (i32, i32, i32) {
    %c0_i32 = arith.constant 0 : i32
    %c0_i32_0 = arith.constant 0 : i32
    return %arg0, %arg1, %c0_i32 : i32, i32, i32
  }
  func.func @transform_1(%arg0: i32, %arg1: i32) -> (i32, i32) {
    %c0_i32 = arith.constant 0 : i32
    %c0_i32_0 = arith.constant 0 : i32
    %c0_i32_1 = arith.constant 0 : i32
    return %c0_i32, %c0_i32_0 : i32, i32
  }
  func.func @transform_2(%arg0: i32, %arg1: i32) -> (i32, i32) {
    %c0_i32 = arith.constant 0 : i32
    %c0_i32_0 = arith.constant 0 : i32
    %c0_i32_1 = arith.constant 0 : i32
    return %c0_i32, %c0_i32_0 : i32, i32
  }
  func.func @transform_3(%arg0: i32, %arg1: i32) -> (i32, i32) {
    %c0_i32 = arith.constant 0 : i32
    %c0_i32_0 = arith.constant 0 : i32
    %c0_i32_1 = arith.constant 0 : i32
    return %c0_i32, %c0_i32_0 : i32, i32
  }
  func.func @transform_4(%arg0: i32, %arg1: i32) -> (i32, i32, i32, i32) {
    %c0_i32 = arith.constant 0 : i32
    %c0_i32_0 = arith.constant 0 : i32
    %c0_i32_1 = arith.constant 0 : i32
    return %arg0, %c0_i32, %c0_i32_0, %arg1 : i32, i32, i32, i32
  }
}

</mosaic_0001>

<bundles_post_ra>
// kernel: tpu_custom_call.1
= control target key start
LH: loop header
LB: loop body
LE: loop exit
PB: predicated region body
PF: predicated region fallthrough
CT: control target
= control target key end

     0   :  { %9 = vsyncpa [#allocation3], 0  ;;  %s821_s0 = inlined_call_operand.vmem [shape: f32[2,8,32], index: 0, kind: input, shape index: {}]   ;;  %s822_s1 = inlined_call_operand.vmem [shape: bf16[64,32], index: 1, kind: input, shape index: {}]   ;;  %s823_s2 = inlined_call_operand.vmem [shape: f32[1,32], index: 2, kind: input, shape index: {}]   ;;  %s824_s3 = inlined_call_operand.vmem [shape: f32[1,32], index: 3, kind: input, shape index: {}]   ;;  %s825_s4 = inlined_call_operand.hbm [shape: bf16[2,8,8,8], index: 4, kind: output, shape index: {}]  }
   0x1   :  { %11 = vsyncpa [#allocation3 + $0x1], 0  ;;  %s688_s15 = smov 0   ;;  %s690_s16 = smov 0  }
   0x2   :  { %s692_s17 = smov 0   ;;  %s694_s18 = smov 0  }
   0x3   :  { %s696_s19 = smov 0   ;;  %s698_s20 = smov 0  }
   0x4 LB: > { %s472_s21 = sadd.s32 4294967295, %s658_s20   ;;  %s473_s22 = sadd.s32 4294967294, %s658_s20   ;;  %s658_s20 = sphi %s698_s20, %s17_s20   ;;  %s654_s19 = sphi %s696_s19, %s832_s19   ;;  %s650_s18 = sphi %s694_s18, %s831_s18   ;;  %s646_s17 = sphi %s692_s17, %s830_s17   ;;  %s642_s16 = sphi %s690_s16, %s829_s16   ;;  %s638_s15 = sphi %s688_s15, %s828_s15  }
   0x5   : > { %s29_s23 = sadd.s32 1, %s654_s19  ;;  %s129_s24 = sadd.s32 1, %s646_s17 }
   0x6   : > { %p31_p0 = scmp.ge.s32.totalorder %s29_s23, 2  ;;  %p139_p1 = scmp.ne.s32.totalorder %s646_s17, %s642_s16 }
   0x7   : > { %p140_p2 = scmp.eq.s32.totalorder %s472_s21, 1  ;;  %p145_p3 = scmp.ne.s32.totalorder %s642_s16, %s638_s15 }
   0x8   : > { %s834_s23 = smov (%p31_p0, %s29_s23), 0  ;;  %p146_p5 = scmp.eq.s32.totalorder %s473_s22, 1 }
   0x9   : > { %p728_p4 = por %p140_p2, %p139_p1  ;;  %s124_s26 = ssub.s32 %s654_s19, %s834_s23 }
   0xa   : > { %p476_p6 = scmp.ge.s32.totalorder %s658_s20, 1  ;;  %p127_p7 = scmp.eq.s32.totalorder %s124_s26, 0 }
   0xb   : > { %p735_p8 = por %p146_p5, %p145_p3  ;;  %p183_p9 = scmp.lt.s32.totalorder %s658_s20, 3 }
   0xc   : > { %s741_s28 = scalar_select %p127_p7, %s646_s17, %s129_s24  }
   0xd   : > { %p184_p10 = pnand %p476_p6, %p183_p9 }
   0xe   : > { %p211_p11 = scmp.lt.s32.totalorder (!%p184_p10), %s650_s18, 1  ;;  %s600_s24 = scalar_lea.hbm (!%p184_p10), %s825_s4, 64 }
   0xf   : > { %187 = sbr.rel (%p184_p10) target bundleno = 639 (0x27f), region = 36 }
  0x14   : > { %s212_s29 = scalar_select %p211_p11, %s650_s18, 1  ;;  %vm222_vm0 = vcmask 261120   ;;  %v660_v2 = vmov 32.0   ;;  %v574_v23 = vld [vmem:[%s823_s2] ss:$0 sm:$0xff]  ;;  %v505_v36 = vld [vmem:[%s822_s1 + $0x8] sm:$0xff] }
  0x15   : > { %576 = vrcp.f32 %v660_v2  ;;  %v575_v26 = vld [vmem:[%s824_s3] ss:$0 sm:$0xff]  ;;  %v506_v37 = vld [vmem:[%s822_s1 + $0x10] sm:$0xff]  ;;  %v507_v38 = vld [vmem:[%s822_s1 + $0x18] sm:$0xff]  ;;  %vm371_vm5 = vcmask 60416  }
  0x16   : > { %s478_s30 = sshll.u32 %s212_s29, 3  ;;  %v504_v35 = vld [vmem:[%s822_s1] sm:$0xff] }
  0x17   : > { %s217_s7 = scalar_lea.vmem %s821_s0, %s478_s30  ;;  %s208_s30 = sand.u32 1, %s642_s16  }
  0x18   : > { %v219_v0 = vld [vmem:[%s217_s7] sm:$0xff]  ;;  %s477_s5 = sshll.u32 %s208_s30, 5  ;;  %s508_s7 = sshll.u32 %s650_s18, 5 }
  0x19   : > { %v223_v1 = vsel %vm222_vm0, %v219_v0, 0.0  ;;  %s210_s6 = scalar_lea.vmem [#allocation2], %s477_s5  ;;  %s393_s10 = scalar_lea.hbm %s825_s4, %s508_s7 }
  0x1a   : > { %224 = vadd.xlane.f32.xlu0 %v223_v1  ;;  %s394_s18 = sshll.u32 %s210_s6, 4  ;;  %s396_s11 = sshll.u32 %s393_s10, 4  ;;  %s395_s18 = int_to_ptr.vmem [resolvable:$true] %s394_s18  ;;  %s397_s11 = int_to_ptr.hbm [resolvable:$true] %s396_s11 }
  0x1b   : > { %v577_v3 = vpop.eup %576  ;;  %s381_s12 = scalar_lea.sflag [#allocation3], %s208_s30  ;;  %s594_s13 = sshra.s32 %s397_s11, 4  ;;  %s595_s13 = int_to_ptr.hbm [resolvable:$true] %s594_s13 }
  0x1c   : > { %v227_v4 = vmul.f32 32.0, %v577_v3  ;;  %vm231_vm1 = vweird.f32 %v577_v3  ;;  %s596_s14 = scalar_lea.hbm %s595_s13, 32  ;;  %p601_p1 = scmp.lt.s32.totalorder %s595_s13, %s825_s4 }
  0x1d   : > { %p597_p12 = scmp.ne.s32.totalorder %s595_s13, %s596_s14  ;;  %p602_p2 = scmp.lt.s32.totalorder %s600_s24, %s596_s14 }
  0x1e   : > { %v228_v5 = vsub.f32 1.0, %v227_v4 }
  0x1f   : > { %p598_p13 = pnand %p597_p12, %p728_p4  ;;  %p603_p3 = por %p602_p2, %p601_p1 }
  0x20   : > { %v229_v6 = vmul.f32 %v577_v3, %v228_v5 }
  0x21   : > { %p599_p0 = pneg %p598_p13 }
  0x22   : > { %v230_v7 = vadd.f32 %v577_v3, %v229_v6 }
  0x23   : > { %p604_p5 = pnand %p603_p3, %p599_p0 }
  0x24   : > { %v232_v8 = vsel %vm231_vm1, %v577_v3, %v230_v7 }
  0x8d   : > { %v225_v9 = vpop.xlane.xlu0 %224 }
  0x8e   : > { %v233_v10 = vmul.f32 %v232_v8, %v225_v9 }
  0x90   : > { %v234_v11 = vsub.f32 %v219_v0, %v233_v10 }
  0x92   : > { %v235_v12 = vmul.f32 %v234_v11, %v234_v11 }
  0x94   : > { %v236_v13 = vsel %vm222_vm0, %v235_v12, 0.0 }
  0x95   : > { %237 = vadd.xlane.f32.xlu0 %v236_v13 }
 0x108   : > { %v238_v14 = vpop.xlane.xlu0 %237 }
 0x109   : > { %v239_v15 = vmul.f32 %v238_v14, %v232_v8 }
 0x10b   : > { %v240_v16 = vadd.f32 1e-05, %v239_v15 }
 0x10d   : > { %578 = vrsqrt.f32 %v240_v16  ;;  %vm247_vm3 = vweird.f32 %v240_v16 }
 0x113   : > { %v579_v17 = vpop.eup %578 }
 0x114   : > { %v242_v18 = vmul.f32 %v579_v17, %v240_v16  ;;  %vm248_vm2 = vweird.f32 %v579_v17 }
 0x115   : > { %vm249_vm4 = vmor %vm247_vm3, %vm248_vm2 }
 0x116   : > { %v243_v19 = vmul.f32 %v579_v17, %v242_v18 }
 0x118   : > { %v244_v20 = vmul.f32 0.5, %v243_v19 }
 0x11a   : > { %v245_v21 = vsub.f32 1.5, %v244_v20 }
 0x11c   : > { %v246_v22 = vmul.f32 %v579_v17, %v245_v21 }
 0x11e   : > { %v250_v24 = vsel %vm249_vm4, %v579_v17, %v246_v22 }
 0x11f   : > { %v251_v25 = vmul.f32 %v250_v24, %v234_v11 }
 0x121   : > { %v255_v27 = vmul.f32 %v574_v23, %v251_v25 }
 0x123   : > { %v259_v28 = vadd.f32 %v575_v26, %v255_v27 }
 0x125   : > { %260 = vxpose.xlu1.b32.start.end [1/1] (short) (narrow) %v259_v28, 32 }
 0x1c9   : > { %v276_v29 = vpop.trf.xlu1 }
 0x1d1   : > { %v277_v30 = vpop.trf.xlu1 }
 0x1d2   : > { %v292_v34 = vpack.c.bf16 %v277_v30, %v276_v29 }
 0x1d9   : > { %v278_v31 = vpop.trf.xlu1 }
 0x1e1   : > { %v279_v32 = vpop.trf.xlu1 }
 0x1e2   : > { %v293_v33 = vpack.c.bf16 %v279_v32, %v278_v31 }
 0x1e4   : > { %340 = vmatpush.bf16.msra.mxu0 %v293_v33  ;;  %509 = vmatpush.bf16.msra.mxu1 %v293_v33 }
 0x1e5   : > { %510 = vmatpush.bf16.msra.mxu2 %v293_v33  ;;  %511 = vmatpush.bf16.msra.mxu3 %v293_v33 }
 0x1e8   : > { %341 = vmatpush.bf16.msra.mxu0 %v292_v34  ;;  %512 = vmatpush.bf16.msra.mxu1 %v292_v34 }
 0x1e9   : > { %513 = vmatpush.bf16.msra.mxu2 %v292_v34  ;;  %514 = vmatpush.bf16.msra.mxu3 %v292_v34 }
 0x1eb   : > { %495 = vmatmul.msk.bf16.vlgmr.msra.gmra.mxu0 %vm222_vm0, %v504_v35  ;;  %496 = vmatmul.msk.bf16.vlgmr.msra.gmra.mxu1 %vm222_vm0, %v505_v36 }
 0x1ec   : > { %497 = vmatmul.msk.bf16.vlgmr.msra.gmra.mxu2 %vm222_vm0, %v506_v37  ;;  %498 = vmatmul.msk.bf16.vlgmr.msra.gmra.mxu3 %vm222_vm0, %v507_v38 }
 0x268   : > { %v343_v39 = vpop.f32.mrf.mxu0  ;;  %v348_v40 = vpop.f32.mrf.mxu1 }
 0x269   : > { %v363_v41 = vpack.c.bf16 %v343_v39, %v343_v39  ;;  %v365_v42 = vpack.c.bf16 %v348_v40, %v348_v40 }
 0x26b   : > { %372 = vst.msk [vmem:[%s210_s6] sm:$0xf] %vm371_vm5, %v363_v41 }
 0x26c   : > { %374 = vst.msk [vmem:[%s210_s6 + $0x8] sm:$0xf] %vm371_vm5, %v365_v42 }
 0x26f   : > { %v353_v43 = vpop.f32.mrf.mxu2  ;;  %v358_v44 = vpop.f32.mrf.mxu3 }
 0x270   : > { %v367_v45 = vpack.c.bf16 %v353_v43, %v353_v43  ;;  %v369_v46 = vpack.c.bf16 %v358_v44, %v358_v44  ;;  %v345_v47 = vpop.f32.mrf.mxu0  ;;  %v350_v48 = vpop.f32.mrf.mxu1 }
 0x271   : > { %v364_v49 = vpack.c.bf16 %v345_v47, %v345_v47  ;;  %v366_v50 = vpack.c.bf16 %v350_v48, %v350_v48 }
 0x272   : > { %376 = vst.msk [vmem:[%s210_s6 + $0x10] sm:$0xf] %vm371_vm5, %v367_v45 }
 0x273   : > { %378 = vst.msk [vmem:[%s210_s6 + $0x18] sm:$0xf] %vm371_vm5, %v369_v46 }
 0x274   : > { %373 = vst.msk [vmem:[%s210_s6 + $0x4] sm:$0xf] %vm371_vm5, %v364_v49 }
 0x275   : > { %375 = vst.msk [vmem:[%s210_s6 + $0xc] sm:$0xf] %vm371_vm5, %v366_v50 }
 0x277   : > { %v355_v51 = vpop.f32.mrf.mxu2  ;;  %v360_v52 = vpop.f32.mrf.mxu3 }
 0x278   : > { %v368_v53 = vpack.c.bf16 %v355_v51, %v355_v51  ;;  %v370_v54 = vpack.c.bf16 %v360_v52, %v360_v52 }
 0x27a   : > { %377 = vst.msk [vmem:[%s210_s6 + $0x14] sm:$0xf] %vm371_vm5, %v368_v53 }
 0x27b   : > { %379 = vst.msk [vmem:[%s210_s6 + $0x1c] sm:$0xf] %vm371_vm5, %v370_v54 }
 0x27c   : > { %607 = shalt.err (!%p604_p5)
}
 0x27d   : > { %s661_s30 = smov 64   ;;  %s662_s5 = smov 4  }
 0x27e   : > { %515 = dma.vmem_to_hbm [thread:$0]  (%p728_p4), %s395_s18, 512, %s397_s11, %s381_s12, %s661_s30, %s661_s30, %s662_s5  }
 0x27f PF: > { %p521_p6 = scmp.ge.s32.totalorder %s658_s20, 2  ;;  %s411_s6 = sand.u32 1, %s638_s15  }
 0x280   : > { %s412_s7 = scalar_lea.sflag [#allocation3], %s411_s6 }
 0x281   : > { %p518_p7 = pnand %p521_p6, %p735_p8 }
 0x283   : > { %p519_p9 = pneg %p518_p7 }
 0x285   : > { %633 = dma.done.wait (%p519_p9), %s412_s7, 512  }
 0x286   : > { %635 = vsyncadd (%p519_p9), %s412_s7, 4294966784  ;;  %s17_s20 = sadd.s32 1, %s658_s20   ;;  %s828_s15 = smov %s642_s16 }
 0x287   : > { %p14_p10 = scmp.ge.s32.totalorder %s17_s20, 4   ;;  %s829_s16 = smov %s646_s17 }
 0x288   : > { %s830_s17 = smov %s741_s28  ;;  %s831_s18 = smov %s654_s19 }
 0x289   : > { %s832_s19 = smov %s834_s23  ;;  %16 = sbr.rel (!%p14_p10) target bundleno = 4 (0x4), region = 71 }
 0x28e   :  { %418 = vsyncpa [#allocation3], 1 }
 0x28f   :  { %420 = vsyncpa [#allocation3 + $0x1], 1 }

</bundles_post_ra>
